<compile_context>
chip_gen: v5e
topology: v5e:2x2
jax: 0.10.0
libtpu: 0.0.40
codegen_flags: <defaults>
</compile_context>

<pallas_src>
import numpy as np
import jax
import jax.numpy as jnp
from jax.experimental import pallas as pl
from jax.experimental.pallas import tpu as pltpu

LOG2PI = float(np.log(2.0 * np.pi))


def _softplus(x):
    # numerically stable softplus, same semantics as F.softplus
    return jnp.maximum(x, 0.0) + jnp.log1p(jnp.exp(-jnp.abs(x)))


# ----------------------------------------------------------------------------
# Parameter packing: fuse + precompute + pack everything into one (rows, 128)
# f32 VMEM slab with 8-row-aligned blocks and static offsets.
# ----------------------------------------------------------------------------
def pack_params(p, xd, yd, zd, hd, C):
    f32 = jnp.float32
    # Layer-1 fused: [q_mu_w1 | q_lv_w1 | dec_w1_x (y-rows zeroed)] -> (xd+yd, 3H)
    w1dx = jnp.zeros((xd + yd, hd), f32).at[:xd, :].set(p["dec_w1"][:xd])
    W1 = jnp.concatenate([p["q_mu_w1"], p["q_lv_w1"], w1dx], axis=1)
    b1 = jnp.concatenate([p["q_mu_b1"], p["q_lv_b1"], p["dec_b1"]])[None, :]
    # Encoder layer-2 block-diagonal: [[w2_mu, 0], [0, w2_logvar]] -> (2H, 2Z)
    w2e = (jnp.zeros((2 * hd, 2 * zd), f32)
           .at[:hd, :zd].set(p["q_mu_w2"])
           .at[hd:, zd:].set(p["q_lv_w2"]))
    b2e = jnp.concatenate([p["q_mu_b2"], p["q_lv_b2"]])[None, :]
    w1dz = p["dec_w1"][xd:]                                           # (Z, H)
    # Decoder layer-2 zero-padded to 128 lanes -> lane-dense logits
    w2d = jnp.zeros((hd, 128), f32).at[:, :yd].set(p["dec_w2"])
    b2d = jnp.zeros((1, 128), f32).at[0, :yd].set(p["dec_b2"])

    # Mixture-of-Gaussians prior: all parameter-only math done here, once.
    mu_c = jnp.asarray(p["mu_zc"], f32).T                             # (Z, C)
    var_c = jax.nn.softplus(jnp.asarray(p["logvar_zc"], f32).T)       # (Z, C)
    inv_var = 1.0 / var_c
    rhs = jnp.concatenate([inv_var, -2.0 * mu_c * inv_var], axis=0)   # (2Z, C)
    const = (jnp.sum(mu_c * mu_c * inv_var + jnp.log(var_c), axis=0, keepdims=True)
             + zd * LOG2PI)                                           # (1, C)
    log_w = jax.nn.log_softmax(jnp.asarray(p["logits_c"], f32))[None, :]
    bias_c = log_w - 0.5 * const                                      # (1, C)
    ymask = (jnp.arange(128) < yd).astype(f32)[None, :]               # (1, 128)

    entries = [("W1", W1), ("b1", b1), ("w2e", w2e), ("b2e", b2e),
               ("w1dz", w1dz), ("w2d", w2d), ("b2d", b2d),
               ("rhs", rhs), ("bias_c", bias_c), ("ymask", ymask)]
    offs, blocks, row = {}, [], 0
    for name, arr in entries:
        arr = jnp.asarray(arr, f32)
        r, c = arr.shape
        rr = -(-r // 8) * 8                                           # round rows up to 8
        offs[name] = (row, r, c)
        blocks.append(jnp.zeros((rr, 128), f32).at[:r, :c].set(arr))
        row += rr
    return jnp.concatenate(blocks, axis=0), offs


# ----------------------------------------------------------------------------
# Pallas kernel: full VAE forward for one chunk of Bc rows (one grid step)
# ----------------------------------------------------------------------------
def _make_vae_kernel(dims, offs):
    xd, yd, zd, hd, C, S, Bc = dims
    N = S * Bc
    f32 = jnp.float32

    def kernel(act_ref, p_ref, out_ref):
        def blk(name):
            off, r, c = offs[name]
            return p_ref[off:off + r, 0:c]          # static slice of packed params

        xy = act_ref[0:Bc, 0:xd + yd]               # (Bc, xd+yd)
        y_pad = act_ref[Bc:2 * Bc, :]               # (Bc, 128), zero beyond yd
        eps2 = act_ref[2 * Bc:(2 + S) * Bc, 0:zd]   # (S*Bc, Z), s-major

        # ---- fused layer 1: encoder mu/logvar + decoder x-path in ONE dot ----
        a1 = jnp.dot(xy, blk("W1"), preferred_element_type=f32) + blk("b1")   # (Bc, 3H)
        h_enc = jnp.maximum(a1[:, :2 * hd], 0.0)                              # (Bc, 2H)
        hx = a1[:, 2 * hd:3 * hd]                                             # (Bc, H) incl. dec bias

        # ---- q(z | x, y) ------------------------------------------------------
        enc2 = jnp.dot(h_enc, blk("w2e"), preferred_element_type=f32) + blk("b2e")  # (Bc, 2Z)
        mu = enc2[:, :zd]
        var = _softplus(enc2[:, zd:])
        sd = jnp.sqrt(var)

        # ---- reparameterized samples + sum log q(z|x,y), all 2-D ---------------
        mu_rep = jnp.concatenate([mu] * S, axis=0)              # (N, Z)
        sd_rep = jnp.concatenate([sd] * S, axis=0)
        var_rep = jnp.concatenate([var] * S, axis=0)
        z2 = mu_rep + eps2 * sd_rep                              # (N, Z)
        diff = z2 - mu_rep
        sum_log_q = -0.5 * (jnp.sum(diff * diff / var_rep)
                            + S * jnp.sum(jnp.log(var))
                            + N * zd * LOG2PI)

        # ---- decoder p(y | x, z): logits lane-padded to 128 ---------------------
        hz = jnp.dot(z2, blk("w1dz"), preferred_element_type=f32)             # (N, H)
        hx_rep = jnp.concatenate([hx] * S, axis=0)                            # (N, H)
        h_d = jnp.maximum(hz + hx_rep, 0.0)
        logits = jnp.dot(h_d, blk("w2d"), preferred_element_type=f32) + blk("b2d")  # (N, 128)

        # ---- sum log p(y | x, z): Bernoulli with logits, masked to yd lanes -----
        y_rep = jnp.concatenate([y_pad] * S, axis=0)                          # (N, 128)
        sum_log_p_y = jnp.sum((y_rep * logits - _softplus(logits)) * blk("ymask"))

        # ---- mixture prior log p(z): one fused dot + precomputed bias -----------
        lhs = jnp.concatenate([z2 * z2, z2], axis=-1)                         # (N, 2Z)
        ab = jnp.dot(lhs, blk("rhs"), preferred_element_type=f32)             # (N, C)
        wl = -0.5 * ab + blk("bias_c")
        m = jnp.max(wl, axis=-1, keepdims=True)
        sum_log_p_z = jnp.sum(
            m + jnp.log(jnp.sum(jnp.exp(wl - m), axis=-1, keepdims=True)))

        # ---- single merged, lane-dense output block -----------------------------
        # rows 0..Bc-1: sample-0 logits; row Bc: [sum_log_p_y, sum_log_q, sum_log_p_z]
        lane = jax.lax.broadcasted_iota(jnp.int32, (8, 128), 1)
        stats = jnp.where(lane == 0, sum_log_p_y,
                          jnp.where(lane == 1, sum_log_q,
                                    jnp.where(lane == 2, sum_log_p_z, 0.0)))
        out_ref[...] = jnp.concatenate([logits[:Bc, :], stats], axis=0)

    return kernel


# ----------------------------------------------------------------------------
# Wrapper: layout plumbing + pallas_call with a grid over batch chunks
# ----------------------------------------------------------------------------
def vae_forward(x, y_true, eps, packed, offs, dims):
    xd, yd, zd, hd, C, S, Bc = dims
    f32 = jnp.float32
    B_total = x.shape[0]
    assert B_total % Bc == 0
    T = B_total // Bc
    N_total = S * B_total
    rows_chunk = (2 + S) * Bc                                 # xy + y + eps rows per chunk
    out_rows = Bc + 8

    # Single packed activation slab: per chunk [xy | y | eps(S*Bc, Z)] lane-padded to 128.
    xy = jnp.concatenate([x, y_true], axis=-1).reshape(T, Bc, xd + yd)
    xy_pad = jnp.zeros((T, Bc, 128), f32).at[:, :, :xd + yd].set(xy)
    y_pad = jnp.zeros((T, Bc, 128), f32).at[:, :, :yd].set(y_true.reshape(T, Bc, yd))
    eps_c = eps.reshape(S, T, Bc, zd).transpose(1, 0, 2, 3).reshape(T, S * Bc, zd)
    eps_pad = jnp.zeros((T, S * Bc, 128), f32).at[:, :, :zd].set(eps_c)
    slab = jnp.concatenate([xy_pad, y_pad, eps_pad], axis=1).reshape(T * rows_chunk, 128)

    kernel = _make_vae_kernel(dims, offs)
    p_rows = packed.shape[0]

    flops = 2 * T * (Bc * (xd + yd) * 3 * hd + Bc * 2 * hd * 2 * zd
                     + S * Bc * zd * hd + S * Bc * hd * 128 + S * Bc * 2 * zd * C)
    transc = T * (2 * S * Bc * 128 + 2 * S * Bc * C + 4 * Bc * zd)
    bytes_acc = 4 * (slab.size + packed.size + T * out_rows * 128)

    out = pl.pallas_call(
        kernel,
        out_shape=jax.ShapeDtypeStruct((T * out_rows, 128), f32),
        grid_spec=pltpu.PrefetchScalarGridSpec(
            num_scalar_prefetch=0,
            grid=(T,),
            in_specs=[
                pl.BlockSpec((rows_chunk, 128), lambda t: (t, 0)),
                pl.BlockSpec((p_rows, 128), lambda t: (0, 0)),    # params resident across grid
            ],
            out_specs=pl.BlockSpec((out_rows, 128), lambda t: (t, 0)),
        ),
        compiler_params=pltpu.CompilerParams(
            dimension_semantics=("parallel",)),
        cost_estimate=pl.CostEstimate(
            flops=int(flops), transcendentals=int(transc), bytes_accessed=int(bytes_acc)),
    )(slab, packed)

    out = out.reshape(T, out_rows, 128)
    logits0 = out[:, :Bc, :yd].reshape(B_total, yd)               # sample-0 logits
    sums = jnp.sum(out[:, Bc, :3], axis=0)                        # [Σ log p_y, Σ log q, Σ log p_z]
    kl = (sums[1] - sums[2]) / N_total
    loss = -(sums[0] / N_total - kl)
    return {"loss": loss, "kl": kl, "logits": logits0}


# ----------------------------------------------------------------------------
# Pure-JAX reference (mirrors the PyTorch module), for validation
# ----------------------------------------------------------------------------
def vae_forward_ref(x, y_true, eps, p):
    S, B, Z = eps.shape
    N = S * B
    xy = jnp.concatenate([x, y_true], axis=-1)
    h_mu = jax.nn.relu(xy @ p["q_mu_w1"] + p["q_mu_b1"])
    mu = h_mu @ p["q_mu_w2"] + p["q_mu_b2"]
    h_lv = jax.nn.relu(xy @ p["q_lv_w1"] + p["q_lv_b1"])
    var = jax.nn.softplus(h_lv @ p["q_lv_w2"] + p["q_lv_b2"])
    z = mu[None] + eps * jnp.sqrt(var)[None]
    log_q = -0.5 * jnp.sum((z - mu[None]) ** 2 / var[None]
                           + jnp.log(var)[None] + LOG2PI, axis=-1).reshape(-1)

    z2 = z.reshape(N, Z)
    x_rep = jnp.broadcast_to(x[None], (S,) + x.shape).reshape(N, -1)
    y_rep = jnp.broadcast_to(y_true[None], (S,) + y_true.shape).reshape(N, -1)
    h = jax.nn.relu(jnp.concatenate([x_rep, z2], -1) @ p["dec_w1"] + p["dec_b1"])
    logits = h @ p["dec_w2"] + p["dec_b2"]
    log_p_y = jnp.sum(y_rep * logits - jax.nn.softplus(logits), axis=-1)

    var_c = jax.nn.softplus(p["logvar_zc"])                       # (C, Z)
    comp = -0.5 * jnp.sum((z2[:, None, :] - p["mu_zc"][None]) ** 2 / var_c[None]
                          + jnp.log(var_c)[None] + LOG2PI, axis=-1)
    log_w = jax.nn.log_softmax(p["logits_c"])
    log_p_z = jax.scipy.special.logsumexp(comp + log_w[None], axis=-1)

    kl = jnp.mean(log_q - log_p_z)
    elbo = jnp.mean(log_p_y) - kl
    return {"loss": -elbo, "kl": kl, "logits": logits.reshape(S, B, -1)[0]}


# ----------------------------------------------------------------------------
def init_params(key, x_dim, y_dim, z_dim, hid, n_components):
    ks = jax.random.split(key, 16)

    def lin(kw, kb, fin, fout):
        w = jax.random.normal(kw, (fin, fout), jnp.float32) / np.sqrt(fin)
        b = 0.1 * jax.random.normal(kb, (fout,), jnp.float32)
        return w, b

    p = {}
    p["q_mu_w1"], p["q_mu_b1"] = lin(ks[0], ks[1], x_dim + y_dim, hid)
    p["q_mu_w2"], p["q_mu_b2"] = lin(ks[2], ks[3], hid, z_dim)
    p["q_lv_w1"], p["q_lv_b1"] = lin(ks[4], ks[5], x_dim + y_dim, hid)
    p["q_lv_w2"], p["q_lv_b2"] = lin(ks[6], ks[7], hid, z_dim)
    p["dec_w1"], p["dec_b1"] = lin(ks[8], ks[9], x_dim + z_dim, hid)
    p["dec_w2"], p["dec_b2"] = lin(ks[10], ks[11], hid, y_dim)
    p["logits_c"] = jnp.ones((n_components,), jnp.float32)
    xav = np.sqrt(2.0 / (n_components + z_dim))
    p["mu_zc"] = xav * jax.random.normal(ks[12], (n_components, z_dim), jnp.float32)
    p["logvar_zc"] = xav * jax.random.normal(ks[13], (n_components, z_dim), jnp.float32)
    return p


if __name__ == "__main__":
    x_dim, y_dim, z_dim, hid, n_components, n_samples = 16, 8, 16, 32, 4, 4
    Bc, T = 8, 4                      # chunk size (rows per grid step) x number of chunks
    B_total = Bc * T
    dims = (x_dim, y_dim, z_dim, hid, n_components, n_samples, Bc)

    key = jax.random.PRNGKey(0)
    k_x, k_y, k_eps, k_p = jax.random.split(key, 4)
    x = jax.random.normal(k_x, (B_total, x_dim), jnp.float32)
    y_true = jax.random.bernoulli(k_y, 0.5, (B_total, y_dim)).astype(jnp.float32)
    eps = jax.random.normal(k_eps, (n_samples, B_total, z_dim), jnp.float32)
    params = init_params(k_p, x_dim, y_dim, z_dim, hid, n_components)

    # one-time parameter fusion/packing (single resident VMEM slab + static offsets)
    packed, offs = pack_params(params, x_dim, y_dim, z_dim, hid, n_components)

    fwd = jax.jit(lambda x_, y_, e_, p_: vae_forward(x_, y_, e_, p_, offs, dims))
    out = fwd(x, y_true, eps, packed)
    out = jax.tree_util.tree_map(jax.block_until_ready, out)

    ref = vae_forward_ref(x, y_true, eps, params)
    assert jnp.allclose(out["loss"], ref["loss"], atol=5e-4, rtol=5e-4)
    assert jnp.allclose(out["kl"], ref["kl"], atol=5e-4, rtol=5e-4)
    assert jnp.allclose(out["logits"], ref["logits"], atol=5e-4, rtol=5e-4)

    print("KERNEL_OK")
</pallas_src>

<mosaic_0001>
module attributes {stable_mosaic.version = 11 : i64} {
  func.func @kernel(%arg0: i32, %arg1: memref<48x128xf32, #tpu.memory_space<vmem>>, %arg2: memref<208x128xf32, #tpu.memory_space<vmem>>, %arg3: memref<16x128xf32, #tpu.memory_space<vmem>>) attributes {dimension_semantics = [#tpu.dimension_semantics<parallel>], iteration_bounds = array<i64: 4>, scalar_prefetch = 0 : i64, scratch_operands = 0 : i64, tpu.core_type = #tpu.core_type<tc>, window_params = [{transform_indices = @transform_0, window_bounds = array<i64: 48, 128>}, {pipeline_mode = #tpu.pipeline_mode<synchronous>, transform_indices = @transform_1, window_bounds = array<i64: 208, 128>}, {transform_indices = @transform_2, window_bounds = array<i64: 16, 128>}]} {
    %c0 = arith.constant 0 : index
    %c0_0 = arith.constant 0 : index
    %0 = vector.load %arg1[%c0, %c0_0] : memref<48x128xf32, #tpu.memory_space<vmem>>, vector<8x24xf32>
    %c8 = arith.constant 8 : index
    %c0_1 = arith.constant 0 : index
    %1 = vector.load %arg1[%c8, %c0_1] : memref<48x128xf32, #tpu.memory_space<vmem>>, vector<8x128xf32>
    %c16 = arith.constant 16 : index
    %c0_2 = arith.constant 0 : index
    %2 = vector.load %arg1[%c16, %c0_2] : memref<48x128xf32, #tpu.memory_space<vmem>>, vector<32x16xf32>
    %c0_3 = arith.constant 0 : index
    %c0_4 = arith.constant 0 : index
    %3 = vector.load %arg2[%c0_3, %c0_4] : memref<208x128xf32, #tpu.memory_space<vmem>>, vector<24x96xf32>
    %cst = arith.constant dense<0.000000e+00> : vector<8x96xf32>
    %4 = tpu.matmul %0, %3, %cst {dimension_numbers = #tpu.dot_dimension_numbers<[1], [0], [0], [1], [0, 0, 1, 1], [], []>} : vector<8x24xf32>, vector<24x96xf32>, vector<8x96xf32> -> vector<8x96xf32>
    %c24 = arith.constant 24 : index
    %c0_5 = arith.constant 0 : index
    %5 = vector.load %arg2[%c24, %c0_5] : memref<208x128xf32, #tpu.memory_space<vmem>>, vector<1x96xf32>
    %6 = vector.broadcast %5 : vector<1x96xf32> to vector<8x96xf32>
    %7 = arith.addf %4, %6 : vector<8x96xf32>
    %8 = vector.extract_strided_slice %7 {offsets = [0, 0], sizes = [8, 64], strides = [1, 1]} : vector<8x96xf32> to vector<8x64xf32>
    %cst_6 = arith.constant 0.000000e+00 : f32
    %9 = vector.broadcast %cst_6 : f32 to vector<8x64xf32>
    %10 = arith.maximumf %8, %9 : vector<8x64xf32>
    %11 = vector.extract_strided_slice %7 {offsets = [0, 64], sizes = [8, 32], strides = [1, 1]} : vector<8x96xf32> to vector<8x32xf32>
    %c32 = arith.constant 32 : index
    %c0_7 = arith.constant 0 : index
    %12 = vector.load %arg2[%c32, %c0_7] : memref<208x128xf32, #tpu.memory_space<vmem>>, vector<64x32xf32>
    %cst_8 = arith.constant dense<0.000000e+00> : vector<8x32xf32>
    %13 = tpu.matmul %10, %12, %cst_8 {dimension_numbers = #tpu.dot_dimension_numbers<[1], [0], [0], [1], [0, 0, 1, 1], [], []>} : vector<8x64xf32>, vector<64x32xf32>, vector<8x32xf32> -> vector<8x32xf32>
    %c96 = arith.constant 96 : index
    %c0_9 = arith.constant 0 : index
    %14 = vector.load %arg2[%c96, %c0_9] : memref<208x128xf32, #tpu.memory_space<vmem>>, vector<1x32xf32>
    %15 = vector.broadcast %14 : vector<1x32xf32> to vector<8x32xf32>
    %16 = arith.addf %13, %15 : vector<8x32xf32>
    %17 = vector.extract_strided_slice %16 {offsets = [0, 0], sizes = [8, 16], strides = [1, 1]} : vector<8x32xf32> to vector<8x16xf32>
    %18 = vector.extract_strided_slice %16 {offsets = [0, 16], sizes = [8, 16], strides = [1, 1]} : vector<8x32xf32> to vector<8x16xf32>
    %cst_10 = arith.constant 0.000000e+00 : f32
    %19 = vector.broadcast %cst_10 : f32 to vector<8x16xf32>
    %20 = arith.maximumf %18, %19 : vector<8x16xf32>
    %21 = math.absf %18 : vector<8x16xf32>
    %cst_11 = arith.constant 0.000000e+00 : f32
    %22 = vector.broadcast %cst_11 : f32 to vector<8x16xf32>
    %23 = arith.subf %22, %21 : vector<8x16xf32>
    %24 = math.exp %23 : vector<8x16xf32>
    %25 = math.log1p %24 : vector<8x16xf32>
    %26 = arith.addf %20, %25 : vector<8x16xf32>
    %27 = math.sqrt %26 : vector<8x16xf32>
    %28 = tpu.concatenate %17, %17, %17, %17 in 0 : vector<8x16xf32>, vector<8x16xf32>, vector<8x16xf32>, vector<8x16xf32> -> vector<32x16xf32>
    %29 = tpu.concatenate %27, %27, %27, %27 in 0 : vector<8x16xf32>, vector<8x16xf32>, vector<8x16xf32>, vector<8x16xf32> -> vector<32x16xf32>
    %30 = tpu.concatenate %26, %26, %26, %26 in 0 : vector<8x16xf32>, vector<8x16xf32>, vector<8x16xf32>, vector<8x16xf32> -> vector<32x16xf32>
    %31 = arith.mulf %2, %29 : vector<32x16xf32>
    %32 = arith.addf %28, %31 : vector<32x16xf32>
    %33 = arith.subf %32, %28 : vector<32x16xf32>
    %34 = arith.mulf %33, %33 : vector<32x16xf32>
    %35 = arith.divf %34, %30 : vector<32x16xf32>
    %36 = vector.shape_cast %35 : vector<32x16xf32> to vector<1x32x16xf32>
    %cst_12 = arith.constant dense<0.000000e+00> : vector<1xf32>
    %37 = vector.multi_reduction <add>, %36, %cst_12 [1, 2] : vector<1x32x16xf32> to vector<1xf32>
    %38 = vector.shape_cast %37 : vector<1xf32> to vector<1x1x1xf32>
    %39 = vector.extract %38[0, 0, 0] : f32 from vector<1x1x1xf32>
    %40 = math.log %26 : vector<8x16xf32>
    %41 = vector.shape_cast %40 : vector<8x16xf32> to vector<1x8x16xf32>
    %cst_13 = arith.constant dense<0.000000e+00> : vector<1xf32>
    %42 = vector.multi_reduction <add>, %41, %cst_13 [1, 2] : vector<1x8x16xf32> to vector<1xf32>
    %43 = vector.shape_cast %42 : vector<1xf32> to vector<1x1x1xf32>
    %44 = vector.extract %43[0, 0, 0] : f32 from vector<1x1x1xf32>
    %cst_14 = arith.constant 4.000000e+00 : f32
    %45 = arith.mulf %cst_14, %44 : f32
    %46 = arith.addf %39, %45 : f32
    %cst_15 = arith.constant 940.993041 : f32
    %47 = arith.addf %46, %cst_15 : f32
    %cst_16 = arith.constant -5.000000e-01 : f32
    %48 = arith.mulf %cst_16, %47 : f32
    %c104 = arith.constant 104 : index
    %c0_17 = arith.constant 0 : index
    %49 = vector.load %arg2[%c104, %c0_17] : memref<208x128xf32, #tpu.memory_space<vmem>>, vector<16x32xf32>
    %cst_18 = arith.constant dense<0.000000e+00> : vector<32x32xf32>
    %50 = tpu.matmul %32, %49, %cst_18 {dimension_numbers = #tpu.dot_dimension_numbers<[1], [0], [0], [1], [0, 0, 1, 1], [], []>} : vector<32x16xf32>, vector<16x32xf32>, vector<32x32xf32> -> vector<32x32xf32>
    %51 = tpu.concatenate %11, %11, %11, %11 in 0 : vector<8x32xf32>, vector<8x32xf32>, vector<8x32xf32>, vector<8x32xf32> -> vector<32x32xf32>
    %52 = arith.addf %50, %51 : vector<32x32xf32>
    %cst_19 = arith.constant 0.000000e+00 : f32
    %53 = vector.broadcast %cst_19 : f32 to vector<32x32xf32>
    %54 = arith.maximumf %52, %53 : vector<32x32xf32>
    %c120 = arith.constant 120 : index
    %c0_20 = arith.constant 0 : index
    %55 = vector.load %arg2[%c120, %c0_20] : memref<208x128xf32, #tpu.memory_space<vmem>>, vector<32x128xf32>
    %cst_21 = arith.constant dense<0.000000e+00> : vector<32x128xf32>
    %56 = tpu.matmul %54, %55, %cst_21 {dimension_numbers = #tpu.dot_dimension_numbers<[1], [0], [0], [1], [0, 0, 1, 1], [], []>} : vector<32x32xf32>, vector<32x128xf32>, vector<32x128xf32> -> vector<32x128xf32>
    %c152 = arith.constant 152 : index
    %c0_22 = arith.constant 0 : index
    %57 = vector.load %arg2[%c152, %c0_22] : memref<208x128xf32, #tpu.memory_space<vmem>>, vector<1x128xf32>
    %58 = vector.broadcast %57 : vector<1x128xf32> to vector<32x128xf32>
    %59 = arith.addf %56, %58 : vector<32x128xf32>
    %60 = tpu.concatenate %1, %1, %1, %1 in 0 : vector<8x128xf32>, vector<8x128xf32>, vector<8x128xf32>, vector<8x128xf32> -> vector<32x128xf32>
    %61 = arith.mulf %60, %59 : vector<32x128xf32>
    %cst_23 = arith.constant 0.000000e+00 : f32
    %62 = vector.broadcast %cst_23 : f32 to vector<32x128xf32>
    %63 = arith.maximumf %59, %62 : vector<32x128xf32>
    %64 = math.absf %59 : vector<32x128xf32>
    %cst_24 = arith.constant 0.000000e+00 : f32
    %65 = vector.broadcast %cst_24 : f32 to vector<32x128xf32>
    %66 = arith.subf %65, %64 : vector<32x128xf32>
    %67 = math.exp %66 : vector<32x128xf32>
    %68 = math.log1p %67 : vector<32x128xf32>
    %69 = arith.addf %63, %68 : vector<32x128xf32>
    %70 = arith.subf %61, %69 : vector<32x128xf32>
    %c200 = arith.constant 200 : index
    %c0_25 = arith.constant 0 : index
    %71 = vector.load %arg2[%c200, %c0_25] : memref<208x128xf32, #tpu.memory_space<vmem>>, vector<1x128xf32>
    %72 = vector.broadcast %71 : vector<1x128xf32> to vector<32x128xf32>
    %73 = arith.mulf %70, %72 : vector<32x128xf32>
    %74 = vector.shape_cast %73 : vector<32x128xf32> to vector<1x32x128xf32>
    %cst_26 = arith.constant dense<0.000000e+00> : vector<1xf32>
    %75 = vector.multi_reduction <add>, %74, %cst_26 [1, 2] : vector<1x32x128xf32> to vector<1xf32>
    %76 = vector.shape_cast %75 : vector<1xf32> to vector<1x1x1xf32>
    %77 = vector.extract %76[0, 0, 0] : f32 from vector<1x1x1xf32>
    %78 = arith.mulf %32, %32 : vector<32x16xf32>
    %79 = tpu.concatenate %78, %32 in 1 : vector<32x16xf32>, vector<32x16xf32> -> vector<32x32xf32>
    %c160 = arith.constant 160 : index
    %c0_27 = arith.constant 0 : index
    %80 = vector.load %arg2[%c160, %c0_27] : memref<208x128xf32, #tpu.memory_space<vmem>>, vector<32x4xf32>
    %cst_28 = arith.constant dense<0.000000e+00> : vector<32x4xf32>
    %81 = tpu.matmul %79, %80, %cst_28 {dimension_numbers = #tpu.dot_dimension_numbers<[1], [0], [0], [1], [0, 0, 1, 1], [], []>} : vector<32x32xf32>, vector<32x4xf32>, vector<32x4xf32> -> vector<32x4xf32>
    %cst_29 = arith.constant -5.000000e-01 : f32
    %82 = vector.broadcast %cst_29 : f32 to vector<32x4xf32>
    %83 = arith.mulf %82, %81 : vector<32x4xf32>
    %c192 = arith.constant 192 : index
    %c0_30 = arith.constant 0 : index
    %84 = vector.load %arg2[%c192, %c0_30] : memref<208x128xf32, #tpu.memory_space<vmem>>, vector<1x4xf32>
    %85 = vector.broadcast %84 : vector<1x4xf32> to vector<32x4xf32>
    %86 = arith.addf %83, %85 : vector<32x4xf32>
    %cst_31 = arith.constant dense<0xFF800000> : vector<32xf32>
    %87 = vector.multi_reduction <maximumf>, %86, %cst_31 [1] : vector<32x4xf32> to vector<32xf32>
    %88 = vector.shape_cast %87 : vector<32xf32> to vector<32x1xf32>
    %89 = vector.broadcast %88 : vector<32x1xf32> to vector<32x4xf32>
    %90 = arith.subf %86, %89 : vector<32x4xf32>
    %91 = math.exp %90 : vector<32x4xf32>
    %cst_32 = arith.constant dense<0.000000e+00> : vector<32xf32>
    %92 = vector.multi_reduction <add>, %91, %cst_32 [1] : vector<32x4xf32> to vector<32xf32>
    %93 = vector.shape_cast %92 : vector<32xf32> to vector<32x1xf32>
    %94 = math.log %93 : vector<32x1xf32>
    %95 = arith.addf %88, %94 : vector<32x1xf32>
    %96 = vector.shape_cast %95 : vector<32x1xf32> to vector<1x32x1xf32>
    %cst_33 = arith.constant dense<0.000000e+00> : vector<1xf32>
    %97 = vector.multi_reduction <add>, %96, %cst_33 [1, 2] : vector<1x32x1xf32> to vector<1xf32>
    %98 = vector.shape_cast %97 : vector<1xf32> to vector<1x1x1xf32>
    %99 = vector.extract %98[0, 0, 0] : f32 from vector<1x1x1xf32>
    %100 = tpu.iota {dimensions = array<i32: 1>} : vector<8x128xi32>
    %c0_i32 = arith.constant 0 : i32
    %101 = vector.broadcast %c0_i32 : i32 to vector<8x128xi32>
    %102 = arith.cmpi eq, %100, %101 : vector<8x128xi32>
    %c1_i32 = arith.constant 1 : i32
    %103 = vector.broadcast %c1_i32 : i32 to vector<8x128xi32>
    %104 = arith.cmpi eq, %100, %103 : vector<8x128xi32>
    %c2_i32 = arith.constant 2 : i32
    %105 = vector.broadcast %c2_i32 : i32 to vector<8x128xi32>
    %106 = arith.cmpi eq, %100, %105 : vector<8x128xi32>
    %cst_34 = arith.constant 0.000000e+00 : f32
    %107 = vector.broadcast %99 : f32 to vector<8x128xf32>
    %108 = vector.broadcast %cst_34 : f32 to vector<8x128xf32>
    %109 = arith.select %106, %107, %108 : vector<8x128xi1>, vector<8x128xf32>
    %110 = vector.broadcast %48 : f32 to vector<8x128xf32>
    %111 = arith.select %104, %110, %109 : vector<8x128xi1>, vector<8x128xf32>
    %112 = vector.broadcast %77 : f32 to vector<8x128xf32>
    %113 = arith.select %102, %112, %111 : vector<8x128xi1>, vector<8x128xf32>
    %114 = vector.extract_strided_slice %59 {offsets = [0, 0], sizes = [8, 128], strides = [1, 1]} : vector<32x128xf32> to vector<8x128xf32>
    %115 = tpu.concatenate %114, %113 in 0 : vector<8x128xf32>, vector<8x128xf32> -> vector<16x128xf32>
    %c0_35 = arith.constant 0 : index
    %c0_36 = arith.constant 0 : index
    %116 = vector.load %arg3[%c0_35, %c0_36] : memref<16x128xf32, #tpu.memory_space<vmem>>, vector<16x128xf32>
    tpu.vector_store %arg3[%c0_35, %c0_36], %115 {strides = array<i32>} : memref<16x128xf32, #tpu.memory_space<vmem>>, vector<16x128xf32>,
    return
  }
  func.func @transform_0(%arg0: i32) -> (i32, i32) {
    %c0_i32 = arith.constant 0 : i32
    %c0_i32_0 = arith.constant 0 : i32
    return %arg0, %c0_i32 : i32, i32
  }
  func.func @transform_1(%arg0: i32) -> (i32, i32) {
    %c0_i32 = arith.constant 0 : i32
    %c0_i32_0 = arith.constant 0 : i32
    %c0_i32_1 = arith.constant 0 : i32
    return %c0_i32, %c0_i32_0 : i32, i32
  }
  func.func @transform_2(%arg0: i32) -> (i32, i32) {
    %c0_i32 = arith.constant 0 : i32
    %c0_i32_0 = arith.constant 0 : i32
    return %arg0, %c0_i32 : i32, i32
  }
}

</mosaic_0001>

<bundles_post_ra>
// kernel: _lambda_.1
= control target key start
LH: loop header
LB: loop body
LE: loop exit
PB: predicated region body
PF: predicated region fallthrough
CT: control target
= control target key end

     0   :  { %s838_s9 = smov 0   ;;  %s1071_s0 = inlined_call_operand.vmem [shape: f32[192,128], index: 0, kind: input, shape index: {}]   ;;  %s1072_s1 = inlined_call_operand.vmem [shape: f32[208,128], index: 1, kind: input, shape index: {}]   ;;  %s1073_s2 = inlined_call_operand.vmem [shape: f32[64,128], index: 2, kind: output, shape index: {}]  }
   0x1 LB: > { %s718_s10 = sadd.s32 4294967295, %s818_s9   ;;  %p722_p0 = scmp.ge.s32.totalorder %s818_s9, 1  ;;  %s818_s9 = sphi %s838_s9, %s12_s9  }
   0x2   : > { %p113_p1 = scmp.lt.s32.totalorder %s818_s9, 5 }
   0x4   : > { %p114_p2 = pnand %p722_p0, %p113_p1 }
   0x5   : > { %s135_s15 = smul.u32 (!%p114_p2), 6, %s718_s10  ;;  %s820_s16 = smov (!%p114_p2), 112  }
   0x6   : > { %117 = sbr.rel (%p114_p2) target bundleno = 1174 (0x496), region = 28  ;;  %s821_s27 = smov (!%p114_p2), 16  }
   0x7   : > { %p136_p3 = scmp.lt.s32.totalorder (!%p114_p2), %s135_s15, 23  ;;  %s822_s28 = smov (!%p114_p2), 64  }
   0x8   : > { %s724_s17 = sshll.u32 (!%p114_p2), %s718_s10, 1 }
   0x9   : > { %p142_p4 = scmp.lt.s32.totalorder (!%p114_p2), %s724_s17, 7 }
   0xb   : > { %v155_v0 = vld [vmem:[%s1072_s1 + $0x10] sm:$0xff]  ;;  %v154_v1 = vld [vmem:[%s1072_s1 + $0x8] sm:$0xff]  ;;  %v190_v2 = vld [vmem:[%s1072_s1 + $0x58] sm:$0xff]  ;;  %s1075_s15 = smov (!%p136_p3, %s135_s15), 23  ;;  %vm158_vm0 = vcmask 195584   ;;  %vm193_vm1 = vcmask 523264  }
   0xc   : > { %175 = vmatpush.msra.mxu0 %v155_v0  ;;  %v189_v3 = vld [vmem:[%s1072_s1 + $0x50] sm:$0xff]  ;;  %v153_v4 = vld [vmem:[%s1072_s1] sm:$0xff]  ;;  %205 = vmatpush.msra.mxu1 %v190_v2  ;;  %v188_v5 = vld [vmem:[%s1072_s1 + $0x48] sm:$0xff]  ;;  %s723_s26 = sshll.u32 %s1075_s15, 3  ;;  %vm286_vm5 = vcmask 130048   ;;  %vm380_vm6 = vcmask 261120  }
   0xd   : > { %v187_v6 = vld [vmem:[%s1072_s1 + $0x40] sm:$0xff]  ;;  %s872_s29 = scalar_lea.vmem %s1071_s0, %s723_s26  ;;  %v186_v7 = vld [vmem:[%s1072_s1 + $0x38] sm:$0xff]  ;;  %v185_v9 = vld [vmem:[%s1072_s1 + $0x30] sm:$0xff]  ;;  %vm583_vm7 = vcmask 31744   ;;  %s1077_s17 = smov (!%p142_p4, %s724_s17), 7 }
   0xe   : > { %176 = vmatpush.msra.mxu0 %v154_v1  ;;  %206 = vmatpush.msra.mxu1 %v189_v3  ;;  %v147_v8 = vld [vmem:[%s872_s29] sm:$0xff]  ;;  %v184_v10 = vld [vmem:[%s1072_s1 + $0x28] sm:$0xff]  ;;  %v765_v12 = vld [vmem:[%s1072_s1 + $0x18] ss:$0 sm:$0xff]  ;;  %s725_s18 = sshll.u32 %s1077_s17, 3 }
   0xf   : > { %v183_v11 = vld [vmem:[%s1072_s1 + $0x20] sm:$0xff]  ;;  %v324_v43 = vld [vmem:[%s1072_s1 + $0x70] sm:$0xff]  ;;  %v323_v44 = vld [vmem:[%s1072_s1 + $0x68] sm:$0xff]  ;;  %s1016_s22 = scalar_lea.vmem %s1073_s2, %s725_s18 }
  0x10   : > { %177 = vmatpush.msra.mxu0 %v153_v4  ;;  %207 = vmatpush.msra.mxu1 %v188_v5  ;;  %v766_v16 = vld [vmem:[%s1072_s1 + $0x60] ss:$0 sm:$0xff]  ;;  %v149_v45 = vld [vmem:[%s872_s29 + $0x10] sm:$0xff]  ;;  %v150_v46 = vld [vmem:[%s872_s29 + $0x18] sm:$0xff] }
  0x11   : > { %726 = vmatmul.msk.f32.vlgmr.msra.gmra.mxu0 %vm158_vm0, %v147_v8  ;;  %355 = vmatpush.msra.mxu2 %v324_v43  ;;  %v152_v47 = vld [vmem:[%s872_s29 + $0x28] sm:$0xff]  ;;  %v531_v48 = vld [vmem:[%s1072_s1 + $0xb8] sm:$0xff]  ;;  %v530_v49 = vld [vmem:[%s1072_s1 + $0xb0] sm:$0xff]  ;;  %vm632_vm0 = vcmask 7168  }
  0x12   : > { %208 = vmatpush.msra.mxu1 %v187_v6  ;;  %556 = vmatpush.msrb.mxu0 %v531_v48  ;;  %v529_v51 = vld [vmem:[%s1072_s1 + $0xa8] sm:$0xff]  ;;  %v151_v58 = vld [vmem:[%s872_s29 + $0x20] sm:$0xff]  ;;  %v377_v1 = vld [vmem:[%s1072_s1 + $0x90] sm:$0xff] }
  0x13   : > { %356 = vmatpush.msra.mxu2 %v323_v44  ;;  %v528_v61 = vld [vmem:[%s1072_s1 + $0xa0] sm:$0xff]  ;;  %405 = vmatpush.msra.mxu3 %v377_v1  ;;  %v376_v2 = vld [vmem:[%s1072_s1 + $0x88] sm:$0xff]  ;;  %v374_v4 = vld [vmem:[%s1072_s1 + $0x78] sm:$0xff] }
  0x14   : > { %209 = vmatpush.msra.mxu1 %v186_v7  ;;  %557 = vmatpush.msrb.mxu0 %v530_v49  ;;  %v375_v3 = vld [vmem:[%s1072_s1 + $0x80] sm:$0xff]  ;;  %v768_v44 = vld [vmem:[%s1072_s1 + $0x98] ss:$0 sm:$0xff] }
  0x15   : > { %406 = vmatpush.msra.mxu3 %v376_v2 }
  0x16   : > { %210 = vmatpush.msra.mxu1 %v185_v9  ;;  %558 = vmatpush.msrb.mxu0 %v529_v51 }
  0x17   : > { %407 = vmatpush.msra.mxu3 %v375_v3 }
  0x18   : > { %211 = vmatpush.msra.mxu1 %v184_v10  ;;  %559 = vmatpush.msrb.mxu0 %v528_v61 }
  0x19   : > { %408 = vmatpush.msra.mxu3 %v374_v4 }
  0x1a   : > { %212 = vmatpush.msra.mxu1 %v183_v11 }
  0x1c   : > { %742 = vmatpush.msrb.mxu1 %v531_v48 }
  0x1e   : > { %743 = vmatpush.msrb.mxu1 %v530_v49 }
  0x20   : > { %744 = vmatpush.msrb.mxu1 %v529_v51 }
  0x22   : > { %745 = vmatpush.msrb.mxu1 %v528_v61 }
  0x8e   : > { %v179_v13 = vpop.f32.mrf.mxu0 }
  0x8f   : > { %v890_v14 = vadd.f32 %v765_v12, %v179_v13 }
  0x91   : > { %v182_v15 = vmax.f32 %v890_v14, 0.0 }
  0x93   : > { %727 = vmatmul.msk.f32.vlgmr.msra.gmra.mxu1 %vm193_vm1, %v182_v15 }
 0x110   : > { %v214_v17 = vpop.f32.mrf.mxu1 }
 0x111   : > { %v896_v18 = vadd.f32 %v766_v16, %v214_v17 }
 0x113   : > { %v218_v19 = vand.u32 2147483647, %v896_v18  ;;  %v217_v30 = vmax.f32 %v896_v18, 0.0 }
 0x115   : > { %v219_v20 = vsub.f32 0.0, %v218_v19 }
 0x117   : > { %v220_v21 = vmul.f32 1.442695, %v219_v20 }
 0x119   : > { %770 = vpow2.f32 %v220_v21 }
 0x11f   : > { %v771_v22 = vpop.eup %770 }
 0x120   : > { %v222_v23 = vadd.f32 1.0, %v771_v22  ;;  %v225_v24 = vmul.f32 -0.5, %v771_v22  ;;  %v228_v26 = vand.u32 2147483647, %v771_v22 }
 0x122   : > { %772 = vlog2.f32 %v222_v23  ;;  %v226_v25 = vadd.f32 1.0, %v225_v24  ;;  %vm229_vm2 = vcmp.lt.f32.partialorder %v228_v26, 0.0004427343 }
 0x124   : > { %v227_v29 = vmul.f32 %v771_v22, %v226_v25 }
 0x128   : > { %v773_v27 = vpop.eup %772 }
 0x129   : > { %v224_v28 = vmul.f32 0.6931472, %v773_v27 }
 0x12b   : > { %v230_v31 = vsel %vm229_vm2, %v227_v29, %v224_v28  ;;  %v767_v29 = vld [vmem:[%s1072_s1 + $0xc0] ss:$0 sm:$0xff] }
 0x12c   : > { %v900_v32 = vadd.f32 %v230_v31, %v217_v30 }
 0x12e   : > { %774 = vrsqrt.f32 %v900_v32  ;;  %vm239_vm3 = vcmp.eq.f32.partialorder %v900_v32, inf  ;;  %v242_v40 = vand.u32 2147483648, %v900_v32  ;;  %vm241_vm4 = vcmp.eq.f32.partialorder %v900_v32, 0.0 }
 0x134   : > { %v775_v33 = vpop.eup %774 }
 0x135   : > { %v233_v34 = vmul.f32 %v775_v33, %v900_v32 }
 0x137   : > { %v234_v35 = vmul.f32 %v775_v33, %v233_v34 }
 0x139   : > { %v235_v36 = vmul.f32 0.5, %v234_v35 }
 0x13b   : > { %v236_v37 = vsub.f32 1.5, %v235_v36 }
 0x13d   : > { %v237_v38 = vmul.f32 %v775_v33, %v236_v37 }
 0x13f   : > { %v238_v39 = vmul.f32 %v237_v38, %v900_v32 }
 0x141   : > { %v240_v41 = vsel %vm239_vm3, %v900_v32, %v238_v39 }
 0x142   : > { %v243_v42 = vsel %vm241_vm4, %v242_v40, %v240_v41 }
 0x143   : > { %245 = vrot.lane.b32.xlu0 %v243_v42, %s820_s16 }
 0x1b5   : > { %v246_v50 = vpop.permute.xlu0 %245 }
 0x1b6   : > { %v248_v52 = vmul.f32 %v246_v50, %v149_v45  ;;  %v249_v53 = vmul.f32 %v246_v50, %v150_v46  ;;  %v251_v54 = vmul.f32 %v246_v50, %v152_v47  ;;  %v250_v59 = vmul.f32 %v246_v50, %v151_v58 }
 0x1b8   : > { %v929_v55 = vadd.f32 %v251_v54, %v896_v18  ;;  %v932_v56 = vadd.f32 %v249_v53, %v896_v18  ;;  %v935_v57 = vadd.f32 %v248_v52, %v896_v18  ;;  %v944_v60 = vadd.f32 %v250_v59, %v896_v18 }
 0x1ba   : > { %518 = vrot.lane.b32.xlu2 %v929_v55, %s821_s27  ;;  %514 = vrot.lane.b32.xlu1 %v932_v56, %s821_s27  ;;  %v511_v62 = vmul.f32 %v929_v55, %v929_v55  ;;  %v508_v5 = vmul.f32 %v935_v57, %v935_v57  ;;  %v509_v9 = vmul.f32 %v932_v56, %v932_v56 }
 0x1bb   : > { %512 = vrot.lane.b32.xlu0 %v935_v57, %s821_s27  ;;  %728 = vmatmul.msk.f32.vlgmr.msra.gmra.mxu2 %vm286_vm5, %v935_v57  ;;  %v510_v12 = vmul.f32 %v944_v60, %v944_v60 }
 0x1c2   : > { %326 = vrot.lane.b32.xlu2 %v890_v14, %s822_s28  ;;  %516 = vrot.lane.b32.xlu1 %v944_v60, %s821_s27 }
 0x1c3   : > { %729 = vmatmul.msk.f32.gmra.mxu2 %vm286_vm5, %v932_v56 }
 0x1cb   : > { %730 = vmatmul.msk.f32.gmra.mxu2 %vm286_vm5, %v944_v60 }
 0x1d3   : > { %731 = vmatmul.msk.f32.gmra.mxu2 %vm286_vm5, %v929_v55 }
 0x214   : > { %v519_v63 = vpop.permute.xlu2 %518 }
 0x215   : > { %v527_v0 = vsel %vm286_vm5, %v511_v62, %v519_v63 }
 0x216   : > { %739 = vmatmul.msk.f32.vlgmr.msrb.gmra.mxu1 %vm380_vm6, %v527_v0 }
 0x21c   : > { %v327_v13 = vpop.permute.xlu2 %326 }
 0x22c   : > { %v515_v8 = vpop.permute.xlu1 %514 }
 0x22d   : > { %v513_v6 = vpop.permute.xlu0 %512  ;;  %v525_v10 = vsel %vm286_vm5, %v509_v9, %v515_v8 }
 0x22e   : > { %v524_v7 = vsel %vm286_vm5, %v508_v5, %v513_v6 }
 0x22f   : > { %736 = vmatmul.msk.f32.vlgmr.msrb.gmra.mxu0 %vm380_vm6, %v524_v7 }
 0x234   : > { %v517_v11 = vpop.permute.xlu1 %516 }
 0x235   : > { %v526_v15 = vsel %vm286_vm5, %v510_v12, %v517_v11 }
 0x237   : > { %737 = vmatmul.msk.f32.gmra.mxu0 %vm380_vm6, %v525_v10 }
 0x23e   : > { %v358_v14 = vpop.f32.mrf.mxu2 }
 0x23f   : > { %v359_v16 = vadd.f32 %v358_v14, %v327_v13  ;;  %738 = vmatmul.msk.f32.gmra.mxu0 %vm380_vm6, %v526_v15 }
 0x241   : > { %v370_v17 = vmax.f32 %v359_v16, 0.0 }
 0x243   : > { %732 = vmatmul.msk.f32.vlgmr.msra.gmra.mxu3 %vm380_vm6, %v370_v17 }
 0x246   : > { %v361_v19 = vpop.f32.mrf.mxu2 }
 0x247   : > { %v362_v20 = vadd.f32 %v361_v19, %v327_v13 }
 0x249   : > { %v371_v21 = vmax.f32 %v362_v20, 0.0 }
 0x24b   : > { %733 = vmatmul.msk.f32.gmra.mxu3 %vm380_vm6, %v371_v21 }
 0x24e   : > { %v364_v22 = vpop.f32.mrf.mxu2 }
 0x24f   : > { %v365_v23 = vadd.f32 %v364_v22, %v327_v13 }
 0x251   : > { %v372_v24 = vmax.f32 %v365_v23, 0.0  ;;  %v148_v23 = vld [vmem:[%s872_s29 + $0x8] sm:$0xff] }
 0x253   : > { %734 = vmatmul.msk.f32.gmra.mxu3 %vm380_vm6, %v372_v24 }
 0x256   : > { %v367_v25 = vpop.f32.mrf.mxu2 }
 0x257   : > { %v368_v26 = vadd.f32 %v367_v25, %v327_v13 }
 0x259   : > { %v373_v27 = vmax.f32 %v368_v26, 0.0 }
 0x25b   : > { %735 = vmatmul.msk.f32.gmra.mxu3 %vm380_vm6, %v373_v27 }
 0x293   : > { %v570_v40 = vpop.f32.mrf.mxu1 }
 0x294   : > { %v576_v42 = vmul.f32 -0.5, %v570_v40  ;;  %v769_v40 = vld [vmem:[%s1072_s1 + $0xc8] ss:$0 sm:$0xff] }
 0x296   : > { %v1009_v45 = vadd.f32 %v767_v29, %v576_v42 }
 0x298   : > { %v593_v49 = vsel %vm583_vm7, %v1009_v45, -inf }
 0x2ac   : > { %v561_v28 = vpop.f32.mrf.mxu0 }
 0x2ad   : > { %v573_v30 = vmul.f32 -0.5, %v561_v28 }
 0x2af   : > { %v992_v31 = vadd.f32 %v767_v29, %v573_v30 }
 0x2b1   : > { %v584_v33 = vsel %vm583_vm7, %v992_v31, -inf }
 0x2b2   : > { %585 = vmax.xlane.f32.xlu0 %v584_v33 }
 0x2b4   : > { %v564_v34 = vpop.f32.mrf.mxu0 }
 0x2b5   : > { %v574_v35 = vmul.f32 -0.5, %v564_v34 }
 0x2b7   : > { %v996_v36 = vadd.f32 %v767_v29, %v574_v35 }
 0x2b9   : > { %v587_v37 = vsel %vm583_vm7, %v996_v36, -inf }
 0x2ba   : > { %588 = vmax.xlane.f32.xlu1 %v587_v37 }
 0x2bc   : > { %v567_v38 = vpop.f32.mrf.mxu0 }
 0x2bd   : > { %v575_v39 = vmul.f32 -0.5, %v567_v38 }
 0x2bf   : > { %v1002_v41 = vadd.f32 %v767_v29, %v575_v39 }
 0x2c1   : > { %v590_v43 = vsel %vm583_vm7, %v1002_v41, -inf }
 0x2c2   : > { %591 = vmax.xlane.f32.xlu2 %v590_v43 }
 0x2c6   : > { %265 = vrot.lane.b32.xlu0 %v900_v32, %s820_s16  ;;  %v410_v46 = vpop.f32.mrf.mxu3 }
 0x2c7   : > { %v411_v47 = vadd.f32 %v768_v44, %v410_v46 }
 0x2c9   : > { %v430_v48 = vand.u32 2147483647, %v411_v47  ;;  %660 = vst [vmem:[%s1016_s22] sm:$0xff] %v411_v47  ;;  %v426_v20 = vmax.f32 %v411_v47, 0.0  ;;  %v422_v33 = vmul.f32 %v411_v47, %v148_v23 }
 0x2ca   : > { %594 = vmax.xlane.f32.xlu2 %v593_v49 }
 0x2cb   : > { %v434_v50 = vsub.f32 0.0, %v430_v48 }
 0x2cd   : > { %v438_v51 = vmul.f32 1.442695, %v434_v50 }
 0x2ce   : > { %v413_v52 = vpop.f32.mrf.mxu3 }
 0x2cf   : > { %776 = vpow2.f32 %v438_v51  ;;  %v414_v53 = vadd.f32 %v768_v44, %v413_v52 }
 0x2d1   : > { %v431_v54 = vand.u32 2147483647, %v414_v53  ;;  %v427_v34 = vmax.f32 %v414_v53, 0.0  ;;  %v423_v37 = vmul.f32 %v414_v53, %v148_v23 }
 0x2d3   : > { %v435_v58 = vsub.f32 0.0, %v431_v54 }
 0x2d5   : > { %v777_v59 = vpop.eup %776  ;;  %v440_v61 = vmul.f32 1.442695, %v435_v58 }
 0x2d6   : > { %v446_v62 = vadd.f32 1.0, %v777_v59  ;;  %v416_v63 = vpop.f32.mrf.mxu3  ;;  %v449_v1 = vmul.f32 -0.5, %v777_v59  ;;  %v452_v8 = vand.u32 2147483647, %v777_v59 }
 0x2d7   : > { %778 = vpow2.f32 %v440_v61  ;;  %v417_v0 = vadd.f32 %v768_v44, %v416_v63 }
 0x2d8   : > { %780 = vlog2.f32 %v446_v62  ;;  %v450_v5 = vadd.f32 1.0, %v449_v1  ;;  %vm453_vm8 = vcmp.lt.f32.partialorder %v452_v8, 0.0004427343 }
 0x2d9   : > { %v432_v2 = vand.u32 2147483647, %v417_v0  ;;  %v428_v58 = vmax.f32 %v417_v0, 0.0  ;;  %v424_v61 = vmul.f32 %v417_v0, %v148_v23 }
 0x2da   : > { %v451_v14 = vmul.f32 %v777_v59, %v450_v5 }
 0x2db   : > { %v436_v3 = vsub.f32 0.0, %v432_v2 }
 0x2dd   : > { %v779_v4 = vpop.eup %778  ;;  %v442_v6 = vmul.f32 1.442695, %v436_v3 }
 0x2de   : > { %v781_v7 = vpop.eup %780  ;;  %v455_v9 = vadd.f32 1.0, %v779_v4  ;;  %v419_v10 = vpop.f32.mrf.mxu3  ;;  %v458_v12 = vmul.f32 -0.5, %v779_v4  ;;  %v461_v21 = vand.u32 2147483647, %v779_v4 }
 0x2df   : > { %v448_v11 = vmul.f32 0.6931472, %v781_v7  ;;  %782 = vpow2.f32 %v442_v6  ;;  %v420_v13 = vadd.f32 %v768_v44, %v419_v10 }
 0x2e0   : > { %784 = vlog2.f32 %v455_v9  ;;  %v459_v17 = vadd.f32 1.0, %v458_v12  ;;  %vm462_vm9 = vcmp.lt.f32.partialorder %v461_v21, 0.0004427343 }
 0x2e1   : > { %v433_v15 = vand.u32 2147483647, %v420_v13  ;;  %v454_v16 = vsel %vm453_vm8, %v451_v14, %v448_v11  ;;  %v429_v7 = vmax.f32 %v420_v13, 0.0  ;;  %v425_v10 = vmul.f32 %v420_v13, %v148_v23 }
 0x2e2   : > { %v482_v26 = vadd.f32 %v454_v16, %v426_v20  ;;  %v460_v29 = vmul.f32 %v779_v4, %v459_v17 }
 0x2e3   : > { %v437_v19 = vsub.f32 0.0, %v433_v15 }
 0x2e4   : > { %v486_v39 = vsub.f32 %v422_v33, %v482_v26 }
 0x2e5   : > { %v783_v22 = vpop.eup %782  ;;  %v444_v24 = vmul.f32 1.442695, %v437_v19 }
 0x2e6   : > { %v785_v25 = vpop.eup %784  ;;  %v464_v27 = vadd.f32 1.0, %v783_v22  ;;  %v467_v30 = vmul.f32 -0.5, %v783_v22  ;;  %v470_v44 = vand.u32 2147483647, %v783_v22  ;;  %v492_v50 = vmul.f32 %v769_v40, %v486_v39 }
 0x2e7   : > { %v457_v28 = vmul.f32 0.6931472, %v785_v25  ;;  %786 = vpow2.f32 %v444_v24  ;;  %v257_v39 = vsub.f32 %v932_v56, %v896_v18 }
 0x2e8   : > { %788 = vlog2.f32 %v464_v27  ;;  %v468_v42 = vadd.f32 1.0, %v467_v30  ;;  %vm471_vm10 = vcmp.lt.f32.partialorder %v470_v44, 0.0004427343  ;;  %v259_v44 = vsub.f32 %v929_v55, %v896_v18 }
 0x2e9   : > { %v463_v35 = vsel %vm462_vm9, %v460_v29, %v457_v28 }
 0x2ea   : > { %v483_v38 = vadd.f32 %v463_v35, %v427_v34  ;;  %v469_v52 = vmul.f32 %v783_v22, %v468_v42 }
 0x2ec   : > { %v487_v43 = vsub.f32 %v423_v37, %v483_v38  ;;  %v256_v38 = vsub.f32 %v935_v57, %v896_v18  ;;  %v261_v57 = vmul.f32 %v257_v39, %v257_v39 }
 0x2ed   : > { %v787_v46 = vpop.eup %786 }
 0x2ee   : > { %v789_v48 = vpop.eup %788  ;;  %v473_v49 = vadd.f32 1.0, %v787_v46  ;;  %v493_v51 = vmul.f32 %v769_v40, %v487_v43  ;;  %v476_v54 = vmul.f32 -0.5, %v787_v46  ;;  %v479_v2 = vand.u32 2147483647, %v787_v46 }
 0x2ef   : > { %v466_v47 = vmul.f32 0.6931472, %v789_v48  ;;  %v260_v48 = vmul.f32 %v256_v38, %v256_v38 }
 0x2f0   : > { %790 = vlog2.f32 %v473_v49  ;;  %v496_v53 = vadd.f32 %v493_v51, %v492_v50  ;;  %v477_v63 = vadd.f32 1.0, %v476_v54  ;;  %vm480_vm11 = vcmp.lt.f32.partialorder %v479_v2, 0.0004427343 }
 0x2f1   : > { %v472_v59 = vsel %vm471_vm10, %v469_v52, %v466_v47  ;;  %v263_v52 = vmul.f32 %v259_v44, %v259_v44 }
 0x2f2   : > { %v484_v62 = vadd.f32 %v472_v59, %v428_v58  ;;  %v478_v6 = vmul.f32 %v787_v46, %v477_v63 }
 0x2f4   : > { %v488_v1 = vsub.f32 %v424_v61, %v484_v62 }
 0x2f6   : > { %v791_v3 = vpop.eup %790  ;;  %v494_v4 = vmul.f32 %v769_v40, %v488_v1 }
 0x2f7   : > { %v475_v5 = vmul.f32 0.6931472, %v791_v3 }
 0x2f8   : > { %v497_v8 = vadd.f32 %v496_v53, %v494_v4 }
 0x2f9   : > { %v481_v9 = vsel %vm480_vm11, %v478_v6, %v475_v5 }
 0x2fa   : > { %v485_v11 = vadd.f32 %v481_v9, %v429_v7 }
 0x2fc   : > { %v489_v12 = vsub.f32 %v425_v10, %v485_v11 }
 0x2fe   : > { %v495_v14 = vmul.f32 %v769_v40, %v489_v12 }
 0x300   : > { %v1025_v15 = vadd.f32 %v497_v8, %v495_v14 }
 0x325   : > { %v1027_v16 = vpop.xlane.xlu0 %585 }
 0x326   : > { %v596_v0 = vsub.f32 %v992_v31, %v1027_v16 }
 0x328   : > { %v600_v17 = vmul.f32 1.442695, %v596_v0 }
 0x32a   : > { %792 = vpow2.f32 %v600_v17 }
 0x32d   : > { %v1031_v19 = vpop.xlane.xlu1 %588 }
 0x32e   : > { %v597_v20 = vsub.f32 %v996_v36, %v1031_v19 }
 0x330   : > { %v793_v21 = vpop.eup %792  ;;  %v602_v22 = vmul.f32 1.442695, %v597_v20 }
 0x331   : > { %v608_v13 = vsel %vm583_vm7, %v793_v21, 0.0 }
 0x332   : > { %794 = vpow2.f32 %v602_v22  ;;  %609 = vadd.xlane.f32.xlu1 %v608_v13 }
 0x335   : > { %v1036_v23 = vpop.xlane.xlu2 %591 }
 0x336   : > { %v598_v24 = vsub.f32 %v1002_v41, %v1036_v23 }
 0x338   : > { %v795_v25 = vpop.eup %794  ;;  %v604_v31 = vmul.f32 1.442695, %v598_v24  ;;  %v266_v26 = vpop.permute.xlu0 %265 }
 0x339   : > { %796 = vrcp.f32 %v266_v26  ;;  %v611_v27 = vsel %vm583_vm7, %v795_v25, 0.0  ;;  %v279_v37 = vand.u32 2147483648, %v266_v26  ;;  %v277_v42 = vand.u32 2147483647, %v266_v26 }
 0x33a   : > { %798 = vpow2.f32 %v604_v31  ;;  %612 = vadd.xlane.f32.xlu2 %v611_v27  ;;  %vm273_vm13 = vweird.f32 %v266_v26 }
 0x33b   : > { %v280_v46 = vor.u32 1.1754944e-38, %v279_v37  ;;  %vm278_vm15 = vcmp.eq.f32.partialorder %v277_v42, 8.507059e+37 }
 0x33d   : > { %v1041_v36 = vpop.xlane.xlu2 %594 }
 0x33e   : > { %v599_v28 = vsub.f32 %v1009_v45, %v1041_v36  ;;  %v258_v45 = vsub.f32 %v944_v60, %v896_v18 }
 0x33f   : > { %v797_v29 = vpop.eup %796 }
 0x340   : > { %v799_v30 = vpop.eup %798  ;;  %v269_v33 = vmul.f32 %v797_v29, %v266_v26  ;;  %v606_v34 = vmul.f32 1.442695, %v599_v28  ;;  %vm274_vm12 = vweird.f32 %v797_v29  ;;  %v262_v50 = vmul.f32 %v258_v45, %v258_v45 }
 0x341   : > { %v614_v35 = vsel %vm583_vm7, %v799_v30, 0.0  ;;  %vm275_vm14 = vmor %vm273_vm13, %vm274_vm12 }
 0x342   : > { %v270_v41 = vsub.f32 1.0, %v269_v33  ;;  %800 = vpow2.f32 %v606_v34  ;;  %615 = vadd.xlane.f32.xlu1 %v614_v35 }
 0x343   : > { %802 = vlog2.f32 %v900_v32 }
 0x344   : > { %v271_v40 = vmul.f32 %v797_v29, %v270_v41 }
 0x346   : > { %v272_v43 = vadd.f32 %v797_v29, %v271_v40 }
 0x348   : > { %v801_v49 = vpop.eup %800  ;;  %v276_v51 = vsel %vm275_vm14, %v797_v29, %v272_v43 }
 0x349   : > { %v617_v56 = vsel %vm583_vm7, %v801_v49, 0.0  ;;  %v281_v47 = vsel %vm278_vm15, %v280_v46, %v276_v51  ;;  %v803_v2 = vpop.eup %802 }
 0x34a   : > { %618 = vadd.xlane.f32.xlu2 %v617_v56  ;;  %v282_v54 = vmul.f32 %v281_v47, %v260_v48  ;;  %v283_v60 = vmul.f32 %v281_v47, %v261_v57  ;;  %v284_v58 = vmul.f32 %v281_v47, %v262_v50  ;;  %v285_v53 = vmul.f32 %v281_v47, %v263_v52 }
 0x34b   : > { %v304_v3 = vmul.f32 0.6931472, %v803_v2 }
 0x34c   : > { %v287_v59 = vsel %vm286_vm5, %v282_v54, 0.0  ;;  %v288_v18 = vsel %vm286_vm5, %v283_v60, 0.0  ;;  %v290_v61 = vsel %vm286_vm5, %v284_v58, 0.0  ;;  %v292_v63 = vsel %vm286_vm5, %v285_v53, 0.0 }
 0x34d   : > { %v289_v55 = vadd.f32 %v288_v18, %v287_v59  ;;  %v649_v58 = vlaneseq }
 0x34f   : > { %v291_v62 = vadd.f32 %v290_v61, %v289_v55  ;;  %v650_v53 = vand.u32 127, %v649_v58 }
 0x351   : > { %v293_v1 = vadd.f32 %v292_v63, %v291_v62  ;;  %vm653_vm1 = vcmp.eq.s32.totalorder %v650_v53, 2  ;;  %vm652_vm2 = vcmp.eq.s32.totalorder %v650_v53, 1  ;;  %vm651_vm3 = vcmp.eq.s32.totalorder %v650_v53, 0 }
 0x353   : > { %294 = vadd.xlane.f32.xlu0 %v293_v1 }
 0x35b   : > { %306 = vrot.lane.b32.xlu1 %v304_v3, %s820_s16 }
 0x3a5   : > { %v610_v4 = vpop.xlane.xlu1 %609 }
 0x3ad   : > { %v613_v5 = vpop.xlane.xlu2 %612 }
 0x3ae   : > { %804 = vlog2.f32 %v613_v5 }
 0x3af   : > { %806 = vlog2.f32 %v610_v4 }
 0x3b4   : > { %v805_v11 = vpop.eup %804 }
 0x3b5   : > { %v616_v6 = vpop.xlane.xlu1 %615  ;;  %v807_v32 = vpop.eup %806  ;;  %v623_v20 = vmul.f32 0.6931472, %v805_v11 }
 0x3b6   : > { %808 = vlog2.f32 %v616_v6  ;;  %v621_v24 = vmul.f32 0.6931472, %v807_v32 }
 0x3b7   : > { %v629_v26 = vadd.f32 %v623_v20, %v1031_v19 }
 0x3b8   : > { %v628_v28 = vadd.f32 %v621_v24, %v1027_v16 }
 0x3b9   : > { %v634_v30 = vsel %vm632_vm0, %v629_v26, 0.0 }
 0x3ba   : > { %v633_v34 = vsel %vm632_vm0, %v628_v28, 0.0 }
 0x3bb   : > { %v635_v41 = vadd.f32 %v634_v30, %v633_v34 }
 0x3bc   : > { %v809_v14 = vpop.eup %808 }
 0x3bd   : > { %v619_v7 = vpop.xlane.xlu2 %618  ;;  %v625_v25 = vmul.f32 0.6931472, %v809_v14 }
 0x3be   : > { %810 = vlog2.f32 %v619_v7 }
 0x3bf   : > { %v630_v29 = vadd.f32 %v625_v25, %v1036_v23 }
 0x3c1   : > { %v636_v35 = vsel %vm632_vm0, %v630_v29, 0.0 }
 0x3c2   : > { %v637_v38 = vadd.f32 %v636_v35, %v635_v41 }
 0x3c4   : > { %v811_v22 = vpop.eup %810 }
 0x3c5   : > { %v627_v27 = vmul.f32 0.6931472, %v811_v22 }
 0x3c6   : > { %v295_v8 = vpop.xlane.xlu0 %294 }
 0x3c7   : > { %v296_v9 = vrot.slane %v295_v8, 4  ;;  %v631_v33 = vadd.f32 %v627_v27, %v1041_v36 }
 0x3c9   : > { %v297_v10 = vadd.f32 %v296_v9, %v295_v8  ;;  %v638_v37 = vsel %vm632_vm0, %v631_v33, 0.0 }
 0x3ca   : > { %v639_v39 = vadd.f32 %v638_v37, %v637_v38 }
 0x3cb   : > { %v298_v12 = vrot.slane %v297_v10, 2 }
 0x3cd   : > { %v307_v0 = vpop.permute.xlu1 %306  ;;  %v299_v17 = vadd.f32 %v298_v12, %v297_v10 }
 0x3ce   : > { %v309_v21 = vsel %vm286_vm5, %v307_v0, 0.0 }
 0x3cf   : > { %310 = vadd.xlane.f32.xlu2 %v309_v21  ;;  %v300_v13 = vrot.slane %v299_v17, 1 }
 0x3d1   : > { %v301_v31 = vadd.f32 %v300_v13, %v299_v17 }
 0x3d3   : > { %746 = vpush %v301_v31 }
 0x3d7   : > { %499 = vadd.xlane.f32.xlu2 %v1025_v15 }
 0x3df   : > { %640 = vadd.xlane.f32.xlu2 %v639_v39 }
 0x404   : > { %s747_s29 = spop %746 }
 0x442   : > { %v311_v19 = vpop.xlane.xlu2 %310 }
 0x443   : > { %v312_v40 = vrot.slane %v311_v19, 4 }
 0x445   : > { %v313_v42 = vadd.f32 %v312_v40, %v311_v19 }
 0x447   : > { %v314_v45 = vrot.slane %v313_v42, 2 }
 0x449   : > { %v315_v16 = vadd.f32 %v314_v45, %v313_v42 }
 0x44a   : > { %v500_v43 = vpop.xlane.xlu2 %499 }
 0x44b   : > { %v501_v23 = vrot.slane %v500_v43, 4  ;;  %v316_v44 = vrot.slane %v315_v16, 1 }
 0x44d   : > { %v502_v46 = vadd.f32 %v501_v23, %v500_v43  ;;  %v317_v48 = vadd.f32 %v316_v44, %v315_v16 }
 0x44f   : > { %v503_v36 = vrot.slane %v502_v46, 2  ;;  %748 = vpush %v317_v48 }
 0x451   : > { %v504_v15 = vadd.f32 %v503_v36, %v502_v46 }
 0x452   : > { %v641_v49 = vpop.xlane.xlu2 %640 }
 0x453   : > { %v642_v57 = vrot.slane %v641_v49, 4  ;;  %v505_v50 = vrot.slane %v504_v15, 1 }
 0x455   : > { %v643_v51 = vadd.f32 %v642_v57, %v641_v49  ;;  %v506_v56 = vadd.f32 %v505_v50, %v504_v15 }
 0x457   : > { %v644_v47 = vrot.slane %v643_v51, 2  ;;  %750 = vpush %v506_v56 }
 0x459   : > { %v645_v52 = vadd.f32 %v644_v47, %v643_v51 }
 0x45b   : > { %v646_v54 = vrot.slane %v645_v52, 1 }
 0x45d   : > { %v647_v60 = vadd.f32 %v646_v54, %v645_v52 }
 0x45f   : > { %752 = vpush %v647_v60 }
 0x480   : > { %s749_s16 = spop %748 }
 0x481   : > { %s319_s25 = smul.f32 4.0, %s749_s16 }
 0x483   : > { %s320_s26 = sadd.f32 %s747_s29, %s319_s25 }
 0x485   : > { %s321_s27 = sadd.f32 940.99304, %s320_s26 }
 0x487   : > { %s322_s28 = smul.f32 -0.5, %s321_s27 }
 0x488   : > { %s751_s30 = spop %750 }
 0x489   : > { %v656_v18 = vstv %s322_s28  ;;  %v658_v61 = vstv %s751_s30 }
 0x490   : > { %s753_s3 = spop %752 }
 0x491   : > { %v654_v59 = vstv %s753_s3 }
 0x492   : > { %v655_v55 = vsel %vm653_vm1, %v654_v59, 0.0 }
 0x493   : > { %v657_v62 = vsel %vm652_vm2, %v656_v18, %v655_v55 }
 0x494   : > { %v659_v63 = vsel %vm651_vm3, %v658_v61, %v657_v62 }
 0x495   : > { %661 = vst [vmem:[%s1016_s22 + $0x8] sm:$0xff] %v659_v63 }
 0x496 PF: > { %s12_s9 = sadd.s32 1, %s818_s9  }
 0x497   : > { %p9_p5 = scmp.ge.s32.totalorder %s12_s9, 6  }
 0x499   :  { %11 = sbr.rel (!%p9_p5) target bundleno = 1 (0x1), region = 58 }

</bundles_post_ra>
